<compile_context>
chip_gen: v7x
topology: tpu7x:2x2x1
jax: 0.10.0
libtpu: 0.0.40
codegen_flags: <defaults>
</compile_context>

<pallas_src>
import jax
import jax.numpy as jnp
from jax.experimental import pallas as pl
from jax.experimental.pallas import tpu as pltpu


def _channel_shuffle_kernel(x_ref, o_ref):
    # x_ref: (1, groups, cpg, tn)  -- input channels ordered (g, j)
    # o_ref: (1, cpg, groups, tn)  -- output channels ordered (j, g)
    groups = x_ref.shape[1]
    cpg = x_ref.shape[2]
    # Static Python loop over the smaller middle axis; the other side of each
    # copy is a contiguous (rows, tn) slab in VMEM.
    if cpg <= groups:
        for j in range(cpg):
            # strided sublane gather on the load, dense slab store
            o_ref[0, j, :, :] = x_ref[0, :, j, :]
    else:
        for g in range(groups):
            # dense slab load, strided sublane scatter on the store
            o_ref[0, :, g, :] = x_ref[0, g, :, :]


def channel_shuffle(x_nchw, groups, *, max_tn=2048, per_buffer_bytes=4 * 1024 * 1024):
    """ChannelShuffle forward: same semantics as the PyTorch module."""
    N, C, H, W = x_nchw.shape
    if C % groups != 0:
        raise ValueError("channels must be divisible by groups")
    cpg = C // groups
    HW = H * W
    itemsize = jnp.dtype(x_nchw.dtype).itemsize

    # Spatial (lane) tile: a multiple of 128 when possible, budgeted so the
    # double-buffered in+out tiles stay well under the scoped VMEM limit on
    # every TPU generation (v5e 16 MiB / v6e 32 MiB / v7x 32 of 64 MiB).
    if HW % 128 == 0:
        budget_tn = max(128, (per_buffer_bytes // (C * itemsize)) // 128 * 128)
        tn = int(min(HW, max_tn, budget_tn))
    else:
        # TODO(synk): lane-sparse spatial extents (H*W not a multiple of 128)
        # fall back to a single full-extent spatial block (masked stores).
        tn = HW

    x4 = x_nchw.reshape(N, groups, cpg, HW)          # free, contiguous reshape
    grid = (N, pl.cdiv(HW, tn))

    out4 = pl.pallas_call(
        _channel_shuffle_kernel,
        out_shape=jax.ShapeDtypeStruct((N, cpg, groups, HW), x_nchw.dtype),
        grid_spec=pltpu.PrefetchScalarGridSpec(
            num_scalar_prefetch=0,
            grid=grid,
            in_specs=[
                pl.BlockSpec((1, groups, cpg, tn), lambda n, h: (n, 0, 0, h)),
            ],
            out_specs=pl.BlockSpec((1, cpg, groups, tn), lambda n, h: (n, 0, 0, h)),
        ),
        compiler_params=pltpu.CompilerParams(
            dimension_semantics=("parallel", "parallel"),
            vmem_limit_bytes=32 * 1024 * 1024,
        ),
        cost_estimate=pl.CostEstimate(
            flops=0,
            transcendentals=0,
            bytes_accessed=2 * N * C * HW * itemsize,
        ),
    )(x4)

    return out4.reshape(N, C, H, W)


def _channel_shuffle_ref(x, groups):
    """Pure-JAX reference (mirrors the PyTorch implementation)."""
    N, C, H, W = x.shape
    cpg = C // groups
    return jnp.swapaxes(x.reshape(N, groups, cpg, H, W), 1, 2).reshape(N, C, H, W)


if __name__ == "__main__":
    key = jax.random.PRNGKey(0)

    # Small shapes consistent with the module under test.
    N, C, H, W = 2, 4, 16, 16
    groups = 2
    x = jax.random.normal(key, (N, C, H, W), dtype=jnp.float32)

    out = channel_shuffle(x, groups)
    out = jax.block_until_ready(out)
    ref = _channel_shuffle_ref(x, groups)
    assert out.shape == ref.shape
    assert bool(jnp.array_equal(out, ref)), "mismatch vs reference (small case)"

    # Slightly larger case: exercises multi-block spatial tiling (H*W > tn)
    # and the other kernel branch (cpg > groups).
    N2, C2, H2, W2, g2 = 2, 8, 64, 64, 2
    x2 = jax.random.normal(jax.random.PRNGKey(1), (N2, C2, H2, W2), jnp.float32)
    out2 = jax.block_until_ready(channel_shuffle(x2, g2))
    assert bool(jnp.array_equal(out2, _channel_shuffle_ref(x2, g2))), "mismatch (tiled case)"

    print("KERNEL_OK")
</pallas_src>

<mosaic_0001>
module attributes {stable_mosaic.version = 11 : i64} {
  func.func @_channel_shuffle_kernel(%arg0: i32, %arg1: i32, %arg2: memref<1x2x2x256xf32, #tpu.memory_space<vmem>>, %arg3: memref<1x2x2x256xf32, #tpu.memory_space<vmem>>) attributes {dimension_semantics = [#tpu.dimension_semantics<parallel>, #tpu.dimension_semantics<parallel>], iteration_bounds = array<i64: 2, 1>, scalar_prefetch = 0 : i64, scratch_operands = 0 : i64, tpu.core_type = #tpu.core_type<tc>, window_params = [{transform_indices = @transform_0, window_bounds = array<i64: 1, 2, 2, 256>}, {transform_indices = @transform_1, window_bounds = array<i64: 1, 2, 2, 256>}]} {
    %c0 = arith.constant 0 : index
    %c0_0 = arith.constant 0 : index
    %c0_1 = arith.constant 0 : index
    %c0_2 = arith.constant 0 : index
    %0 = vector.load %arg2[%c0, %c0_0, %c0_1, %c0_2] : memref<1x2x2x256xf32, #tpu.memory_space<vmem>>, vector<1x2x1x256xf32>
    %1 = vector.shape_cast %0 : vector<1x2x1x256xf32> to vector<2x256xf32>
    %c0_3 = arith.constant 0 : index
    %c0_4 = arith.constant 0 : index
    %c0_5 = arith.constant 0 : index
    %c0_6 = arith.constant 0 : index
    %2 = vector.load %arg3[%c0_3, %c0_4, %c0_5, %c0_6] : memref<1x2x2x256xf32, #tpu.memory_space<vmem>>, vector<1x1x2x256xf32>
    %3 = vector.shape_cast %2 : vector<1x1x2x256xf32> to vector<2x256xf32>
    %4 = vector.shape_cast %1 : vector<2x256xf32> to vector<1x1x2x256xf32>
    tpu.vector_store %arg3[%c0_3, %c0_4, %c0_5, %c0_6], %4 {strides = array<i32>} : memref<1x2x2x256xf32, #tpu.memory_space<vmem>>, vector<1x1x2x256xf32>,
    %c0_7 = arith.constant 0 : index
    %c0_8 = arith.constant 0 : index
    %c1 = arith.constant 1 : index
    %c0_9 = arith.constant 0 : index
    %5 = vector.load %arg2[%c0_7, %c0_8, %c1, %c0_9] : memref<1x2x2x256xf32, #tpu.memory_space<vmem>>, vector<1x2x1x256xf32>
    %6 = vector.shape_cast %5 : vector<1x2x1x256xf32> to vector<2x256xf32>
    %c0_10 = arith.constant 0 : index
    %c1_11 = arith.constant 1 : index
    %c0_12 = arith.constant 0 : index
    %c0_13 = arith.constant 0 : index
    %7 = vector.load %arg3[%c0_10, %c1_11, %c0_12, %c0_13] : memref<1x2x2x256xf32, #tpu.memory_space<vmem>>, vector<1x1x2x256xf32>
    %8 = vector.shape_cast %7 : vector<1x1x2x256xf32> to vector<2x256xf32>
    %9 = vector.shape_cast %6 : vector<2x256xf32> to vector<1x1x2x256xf32>
    tpu.vector_store %arg3[%c0_10, %c1_11, %c0_12, %c0_13], %9 {strides = array<i32>} : memref<1x2x2x256xf32, #tpu.memory_space<vmem>>, vector<1x1x2x256xf32>,
    return
  }
  func.func @transform_0(%arg0: i32, %arg1: i32) -> (i32, i32, i32, i32) {
    %c0_i32 = arith.constant 0 : i32
    %c0_i32_0 = arith.constant 0 : i32
    %c0_i32_1 = arith.constant 0 : i32
    return %arg0, %c0_i32, %c0_i32_0, %arg1 : i32, i32, i32, i32
  }
  func.func @transform_1(%arg0: i32, %arg1: i32) -> (i32, i32, i32, i32) {
    %c0_i32 = arith.constant 0 : i32
    %c0_i32_0 = arith.constant 0 : i32
    %c0_i32_1 = arith.constant 0 : i32
    return %arg0, %c0_i32, %c0_i32_0, %arg1 : i32, i32, i32, i32
  }
}

</mosaic_0001>

<bundles_post_ra>
// kernel: tpu_custom_call.1
= control target key start
LH: loop header
LB: loop body
LE: loop exit
PB: predicated region body
PF: predicated region fallthrough
CT: control target
= control target key end

     0   :  { %6 = vsyncpa [#allocation3], 0  ;;  %s684_s0 = inlined_call_operand.hbm [shape: f32[2,2,2,256], index: 0, kind: input, shape index: {}]   ;;  %s685_s1 = inlined_call_operand.hbm [shape: f32[2,2,2,256], index: 1, kind: output, shape index: {}]  }
   0x1   :  { %8 = vsyncpa [#allocation3 + $0x1], 0 }
   0x2   :  { %9 = vsyncpa [#allocation4], 0 }
   0x3   :  { %11 = vsyncpa [#allocation4 + $0x1], 0  ;;  %s509_s6 = smov 0   ;;  %s511_s7 = smov 0  }
   0x4   :  { %s513_s8 = smov 0   ;;  %s515_s9 = smov 0  }
   0x5   :  { %s517_s10 = smov 0   ;;  %s519_s11 = smov 0  }
   0x6 LB: > { %s290_s12 = sadd.s32 4294967295, %s491_s11   ;;  %s291_s13 = sadd.s32 4294967294, %s491_s11   ;;  %s491_s11 = sphi %s519_s11, %s17_s11   ;;  %s487_s10 = sphi %s517_s10, %s700_s10   ;;  %s483_s9 = sphi %s515_s9, %s699_s9   ;;  %s479_s8 = sphi %s513_s8, %s698_s8   ;;  %s475_s7 = sphi %s511_s7, %s697_s7   ;;  %s471_s6 = sphi %s509_s6, %s696_s6  }
   0x7   : > { %s29_s14 = sadd.s32 1, %s487_s10  ;;  %s38_s15 = sadd.s32 1, %s479_s8 }
   0x8   : > { %p31_p0 = scmp.ge.s32.totalorder %s29_s14, 2  ;;  %p45_p1 = scmp.ne.s32.totalorder %s479_s8, %s475_s7 }
   0x9   : > { %p46_p2 = scmp.eq.s32.totalorder %s491_s11, 0  ;;  %p51_p3 = scmp.ne.s32.totalorder %s475_s7, %s471_s6 }
   0xa   : > { %s702_s14 = smov (%p31_p0, %s29_s14), 0  ;;  %p52_p5 = scmp.eq.s32.totalorder %s290_s12, 0 }
   0xb   : > { %p550_p4 = por %p46_p2, %p45_p1  ;;  %s33_s17 = ssub.s32 %s487_s10, %s702_s14 }
   0xc   : > { %p77_p6 = scmp.eq.s32.totalorder %s290_s12, 1  ;;  %p36_p7 = scmp.eq.s32.totalorder %s33_s17, 0 }
   0xd   : > { %p556_p8 = por %p52_p5, %p51_p3  ;;  %p83_p10 = scmp.eq.s32.totalorder %s291_s13, 1 }
   0xe   : > { %p560_p9 = por %p77_p6, %p45_p1  ;;  %p325_p13 = scmp.lt.s32.totalorder %s491_s11, 2 }
   0xf   : > { %s565_s20 = scalar_select %p36_p7, %s479_s8, %s38_s15  }
  0x10   : > { %s689_s19 = scalar_select %p560_p9, 1, 0 }
  0x11   : > { %p567_p11 = por %p83_p10, %p51_p3  ;;  %s103_s22 = sand.u32 1, %s479_s8  }
  0x12   : > { %s294_s23 = sshll.u32 %s103_s22, 3  ;;  %s310_s24 = sshll.u32 %s487_s10, 7 }
  0x13   : > { %s690_s21 = scalar_select %p567_p11, 1, 0 }
  0x14   : > { %s578_s27 = scalar_lea.hbm %s684_s0, %s310_s24  ;;  %s107_s28 = scalar_lea.vmem [#allocation2], %s294_s23 }
  0x15   : > { %s116_s29 = sshll.u32 %s107_s28, 4  ;;  %p584_p0 = pnand %p325_p13, %p550_p4  ;;  %s580_s29 = int_to_ptr.vmem [resolvable:$true] %s116_s29 }
  0x16   : > { %s589_s2 = scalar_lea.sflag [#allocation3], %s103_s22  ;;  %s379_s3 = scalar_lea.hbm %s578_s27, 128 }
  0x17   : > { %p380_p2 = scmp.ne.s32.totalorder %s578_s27, %s379_s3  ;;  %p381_p3 = pneg %p584_p0 }
  0x18   : > { %s384_s12 = scalar_lea.hbm %s684_s0, 256  ;;  %p385_p4 = scmp.lt.u32.totalorder %s578_s27, %s684_s0 }
  0x19   : > { %p382_p5 = pnand %p381_p3, %p380_p2  ;;  %p386_p7 = scmp.lt.u32.totalorder %s384_s12, %s379_s3 }
  0x1a   : > { %p388_p13 = scmp.lt.u32.totalorder %s379_s3, %s578_s27 }
  0x1b   : > { %p383_p6 = pneg %p382_p5  ;;  %p387_p10 = por %p386_p7, %p385_p4 }
  0x1d   : > { %p389_p12 = por %p388_p13, %p387_p10 }
  0x1f   : > { %p390_p1 = pnand %p389_p12, %p383_p6 }
  0x21   : > { %393 = shalt.err (!%p390_p1)
}
  0x22   : > { %s394_s16 = scalar_lea.vmem %s580_s29, 128  ;;  %s493_s17 = smov [#allocation2]  }
  0x23   : > { %p395_p2 = scmp.ne.s32.totalorder %s580_s29, %s394_s16  ;;  %s399_s22 = sshll.u32 %s493_s17, 4  ;;  %s400_s22 = int_to_ptr.vmem [resolvable:$false] %s399_s22 }
  0x24   : > { %s401_s23 = scalar_lea.vmem %s400_s22, 256  ;;  %p402_p9 = scmp.lt.s32.totalorder %s580_s29, %s400_s22 }
  0x25   : > { %p397_p5 = pnand %p395_p2, %p381_p3  ;;  %p403_p4 = scmp.lt.s32.totalorder %s401_s23, %s394_s16 }
  0x27   : > { %p398_p11 = pneg %p397_p5  ;;  %p404_p7 = por %p403_p4, %p402_p9 }
  0x29   : > { %p405_p10 = pnand %p404_p7, %p398_p11 }
  0x2b   : > { %408 = shalt.err (!%p405_p10)
}
  0x2c   : > { %s494_s24 = smov 64   ;;  %s495_s25 = smov 4  }
  0x2d   : > { %320 = dma.hbm_to_vmem [thread:$0]  (!%p584_p0), %s578_s27, 128, %s580_s29, %s589_s2, %s494_s24, %s494_s24, %s495_s25  }
  0x2e   : > { %p124_p12 = scmp.lt.s32.totalorder %s491_s11, 3  ;;  %p692_p1 = scmp.ge.s32.totalorder %s491_s11, 1 }
  0x30   : > { %p125_p3 = pnand %p692_p1, %p124_p12 }
  0x31   : > { %s621_s26 = sand.u32 (!%p125_p3), 1, %s475_s7  }
  0x32   : > { %128 = sbr.rel (%p125_p3) target bundleno = 86 (0x56), region = 24  ;;  %s298_s28 = sshll.u32 (!%p125_p3), %s621_s26, 3 }
  0x33   : > { %s131_s3 = scalar_lea.sflag (!%p125_p3), [#allocation3], %s621_s26  ;;  %s134_s4 = scalar_lea.vmem (!%p125_p3), [#allocation2], %s298_s28 }
  0x39   : > { %462 = dma.done.wait (%p556_p8), %s131_s3, 128  }
  0x3a   : > { %464 = vsyncadd (%p556_p8), %s131_s3, 4294967168  ;;  %s152_s27 = scalar_lea.vmem [#allocation5], %s298_s28  ;;  %s312_s30 = sshll.u32 %s483_s9, 7  ;;  %v155_v0 = vld [vmem:[%s134_s4] ss:$2 sm:$0x3] }
  0x3b   : > { %s203_s29 = sshll.u32 %s152_s27, 4  ;;  %v300_v1 = vld [vmem:[%s134_s4 + $0x4] ss:$2 sm:$0x3]  ;;  %s635_s18 = scalar_lea.hbm %s685_s1, %s312_s30  ;;  %s630_s29 = int_to_ptr.vmem [resolvable:$true] %s203_s29 }
  0x3c   : > { %v160_v2 = vcombine.low %v155_v0, %v300_v1  ;;  %v302_v3 = vld [vmem:[%s134_s4 + $0x1] ss:$2 sm:$0x3]  ;;  %v303_v4 = vld [vmem:[%s134_s4 + $0x5] ss:$2 sm:$0x3] }
  0x3d   : > { %v176_v5 = vcombine.low %v302_v3, %v303_v4  ;;  %s188_s12 = scalar_lea.sflag [#allocation4], %s621_s26  ;;  %s409_s9 = scalar_lea.vmem %s630_s29, 128 }
  0x3e   : > { %301 = vst.sshfl [vmem:[%s152_s27] sm:$0x33 pattern:$0x75316420] %v160_v2  ;;  %p410_p8 = scmp.ne.s32.totalorder %s630_s29, %s409_s9  ;;  %p693_p9 = scmp.ne.s32.totalorder %s689_s19, 0 }
  0x3f   : > { %311 = vst.sshfl [vmem:[%s152_s27 + $0x4] sm:$0x33 pattern:$0x75316420] %v176_v5  ;;  %s496_s13 = smov [#allocation5]  }
  0x40   : > { %p411_p11 = pnand %p410_p8, %p693_p9  ;;  %s413_s15 = sshll.u32 %s496_s13, 4  ;;  %s414_s15 = int_to_ptr.vmem [resolvable:$false] %s413_s15 }
  0x41   : > { %s415_s16 = scalar_lea.vmem %s414_s15, 256  ;;  %p416_p6 = scmp.lt.s32.totalorder %s630_s29, %s414_s15 }
  0x42   : > { %p412_p0 = pneg %p411_p11  ;;  %p417_p13 = scmp.lt.s32.totalorder %s415_s16, %s409_s9 }
  0x44   : > { %p418_p2 = por %p417_p13, %p416_p6 }
  0x46   : > { %p419_p5 = pnand %p418_p2, %p412_p0 }
  0x48   : > { %422 = shalt.err (!%p419_p5)
}
  0x49   : > { %s423_s17 = scalar_lea.hbm %s635_s18, 128  ;;  %s427_s24 = scalar_lea.hbm %s685_s1, 256 }
  0x4a   : > { %p424_p4 = scmp.ne.s32.totalorder %s635_s18, %s423_s17  ;;  %p428_p12 = scmp.lt.u32.totalorder %s635_s18, %s685_s1 }
  0x4b   : > { %p429_p1 = scmp.lt.u32.totalorder %s427_s24, %s423_s17  ;;  %p431_p8 = scmp.lt.u32.totalorder %s423_s17, %s635_s18 }
  0x4c   : > { %p425_p7 = pnand %p424_p4, %p693_p9 }
  0x4d   : > { %p430_p3 = por %p429_p1, %p428_p12 }
  0x4e   : > { %p426_p10 = pneg %p425_p7 }
  0x4f   : > { %p432_p11 = por %p431_p8, %p430_p3 }
  0x51   : > { %p433_p0 = pnand %p432_p11, %p426_p10 }
  0x53   : > { %436 = shalt.err (!%p433_p0)
}
  0x54   : > { %s497_s3 = smov 64   ;;  %s498_s4 = smov 4  }
  0x55   : > { %315 = dma.vmem_to_hbm [thread:$0]  (%p693_p9), %s630_s29, 128, %s635_s18, %s188_s12, %s497_s3, %s497_s3, %s498_s4  }
  0x56 PF: > { %s218_s27 = sand.u32 1, %s471_s6   ;;  %p694_p6 = scmp.ne.s32.totalorder %s690_s21, 0 }
  0x57   : > { %p695_p13 = scmp.ge.s32.totalorder %s491_s11, 2  ;;  %s219_s30 = scalar_lea.sflag [#allocation4], %s218_s27 }
  0x59   : > { %p322_p2 = pnand %p695_p13, %p694_p6 }
  0x5b   : > { %466 = dma.done.wait (!%p322_p2), %s219_s30, 128  }
  0x5c   : > { %468 = vsyncadd (!%p322_p2), %s219_s30, 4294967168  ;;  %s17_s11 = sadd.s32 1, %s491_s11   ;;  %s696_s6 = smov %s475_s7 }
  0x5d   : > { %p14_p5 = scmp.ge.s32.totalorder %s17_s11, 4   ;;  %s697_s7 = smov %s479_s8 }
  0x5e   : > { %s698_s8 = smov %s565_s20  ;;  %s699_s9 = smov %s487_s10 }
  0x5f   : > { %s700_s10 = smov %s702_s14  ;;  %16 = sbr.rel (!%p14_p5) target bundleno = 6 (0x6), region = 73 }
  0x66   :  { %224 = vsyncpa [#allocation3], 1 }
  0x67   :  { %226 = vsyncpa [#allocation3 + $0x1], 1 }
  0x68   :  { %227 = vsyncpa [#allocation4], 1 }
  0x69   :  { %229 = vsyncpa [#allocation4 + $0x1], 1 }

</bundles_post_ra>
